<compile_context>
chip_gen: v6e
topology: v6e:2x2x1
jax: 0.10.0
libtpu: 0.0.40
codegen_flags: <defaults>
</compile_context>

<pallas_src>
import jax
import jax.numpy as jnp
from jax import lax
from jax.experimental import pallas as pl
from jax.experimental.pallas import tpu as pltpu

NUM_GROUPS = 32
EPS = 1e-5


# --------------------------------------------------------------------------------------
# Fused kernel.  Grid = (B, n_q_tiles).
#   qi == 0 : GroupNorm (f32 stats) + fused QKV projection -> bf16 VMEM scratch (per batch).
#   every qi: (tq, C) q-tile x full-HW keys -> full-row softmax -> @V -> out-proj -> residual.
# --------------------------------------------------------------------------------------
def _attn_block_kernel(x_ref, gamma_ref, beta_ref, pool_ref,
                       wqkv_ref, bqkv_ref, wp_ref, bp_ref,
                       o_ref, q_scr, k_scr, v_scr):
    C = q_scr.shape[-1]
    tq = o_ref.shape[1]
    qi = pl.program_id(1)

    # ---- per-batch GroupNorm + fused QKV projection, computed once (q/k/v never hit HBM) ----
    @pl.when(qi == 0)
    def _gn_qkv():
        x = x_ref[0]                                                    # (HW, C) f32
        # pool_ref is a precomputed (C, C) group-membership matrix scaled by 1/(HW*group_size),
        # so s @ pool yields the per-channel group mean directly (hoisted out of the kernel).
        s1 = jnp.sum(x, axis=0, keepdims=True)                          # (1, C)
        mean = jnp.dot(s1, pool_ref[...], preferred_element_type=jnp.float32)
        d = x - mean
        var = jnp.dot(jnp.sum(d * d, axis=0, keepdims=True), pool_ref[...],
                      preferred_element_type=jnp.float32)               # biased, as in torch
        inv = lax.rsqrt(var + EPS)
        h = (d * inv * gamma_ref[...] + beta_ref[...]).astype(jnp.bfloat16)
        # Single (HW, C) @ (C, 3C) matmul: bf16 operands, f32 accumulation.
        # The C**-0.5 attention scale is already folded into the wq/bq slice by the wrapper.
        qkv = (jnp.dot(h, wqkv_ref[...], preferred_element_type=jnp.float32)
               + bqkv_ref[...])                                         # (HW, 3C) f32
        q_scr[...] = qkv[:, :C].astype(jnp.bfloat16)
        k_scr[...] = qkv[:, C:2 * C].astype(jnp.bfloat16)
        v_scr[...] = qkv[:, 2 * C:].astype(jnp.bfloat16)

    # ---- attention for this q-tile against the full (VMEM-resident) key/value set ----
    row0 = pl.multiple_of(qi * tq, tq)
    q = q_scr[pl.ds(row0, tq), :]                                       # (tq, C) bf16, pre-scaled
    # Contract the channel axis of q and k (same NT dims as the reference flash kernel);
    # no k^T materialization.
    s = lax.dot_general(q, k_scr[...],
                        dimension_numbers=(((1,), (1,)), ((), ())),
                        preferred_element_type=jnp.float32)             # (tq, HW) f32

    # Full-row softmax (keys are fully resident -> no online-softmax rescales needed).
    m = jnp.max(s, axis=-1, keepdims=True)
    p = jnp.exp(s - m)
    l = jnp.sum(p, axis=-1, keepdims=True)
    pv = jnp.dot(p.astype(jnp.bfloat16), v_scr[...],
                 preferred_element_type=jnp.float32)                    # (tq, C) f32
    attn = pv * pl.reciprocal(l, approx=True)                           # EUP reciprocal

    # Output 1x1-conv projection + residual (residual slice comes from the resident x block).
    out = jnp.dot(attn.astype(jnp.bfloat16), wp_ref[...],
                  preferred_element_type=jnp.float32) + bp_ref[...]
    x_tile = x_ref[0, pl.ds(row0, tq), :]                               # (tq, C) f32
    o_ref[0] = (x_tile + out).astype(o_ref.dtype)


# --------------------------------------------------------------------------------------
# Wrapper
# --------------------------------------------------------------------------------------
def _pick_tile(n, pref=512):
    """Largest power-of-two tile (>=8, <=pref) dividing n, else the full dimension."""
    for t in (pref, 512, 256, 128, 64, 32, 16, 8):
        if t <= n and n % t == 0:
            return t
    return n


def _vmem_limit_bytes(default=48 * 1024 * 1024):
    try:
        cap = getattr(pltpu.get_tpu_info(), "vmem_capacity_bytes", None)
        if cap is None:
            return default
        return min(int(cap * 0.85), 100 * 1024 * 1024)
    except Exception:
        return default


def attn_block_pallas(x_nchw, params):
    """x_nchw: (B, C, H, W) float32. params: dict of weights (see init_params)."""
    B, C, H, W = x_nchw.shape
    HW = H * W
    gs = C // NUM_GROUPS
    vmem_limit = _vmem_limit_bytes()

    # NCHW -> token-major (B, HW, C); C on the lane axis.
    x_tok = jnp.transpose(x_nchw, (0, 2, 3, 1)).reshape(B, HW, C)

    # ---- hoisted constants ----
    cid = jnp.arange(C)
    pool = ((cid[:, None] // gs) == (cid[None, :] // gs)).astype(jnp.float32) / float(HW * gs)

    scale = jnp.float32(C) ** -0.5

    def w2d(w):  # conv weight (out, in, 1, 1) -> (in, out) so that y = h @ W
        return w[:, :, 0, 0].T

    # Fused QKV weights (C, 3C); the attention scale is folded into the q slice.
    w_qkv = jnp.concatenate(
        [w2d(params["wq"]) * scale, w2d(params["wk"]), w2d(params["wv"])],
        axis=1).astype(jnp.bfloat16)
    b_qkv = jnp.concatenate(
        [params["bq"] * scale, params["bk"], params["bv"]]).reshape(1, 3 * C).astype(jnp.float32)
    wp = w2d(params["wp"]).astype(jnp.bfloat16)
    bp = params["bp"].reshape(1, C).astype(jnp.float32)
    gamma = params["gn_gamma"].reshape(1, C).astype(jnp.float32)
    beta = params["gn_beta"].reshape(1, C).astype(jnp.float32)

    tq = _pick_tile(HW, 512)
    n_q = HW // tq

    const = lambda shape: pl.BlockSpec(shape, lambda b, qi: (0, 0))

    out_tok = pl.pallas_call(
        _attn_block_kernel,
        out_shape=jax.ShapeDtypeStruct((B, HW, C), x_nchw.dtype),
        grid_spec=pltpu.PrefetchScalarGridSpec(
            num_scalar_prefetch=0,
            grid=(B, n_q),
            in_specs=[
                # Full per-batch x block, resident across all q-tiles of the same batch
                # (used for GroupNorm stats at qi==0 and for the residual slice every step).
                pl.BlockSpec((1, HW, C), lambda b, qi: (b, 0, 0)),
                const((1, C)), const((1, C)),          # gamma, beta
                const((C, C)),                         # group-pool matrix
                const((C, 3 * C)), const((1, 3 * C)),  # fused QKV weight / bias (q pre-scaled)
                const((C, C)), const((1, C)),          # output-proj weight / bias
            ],
            out_specs=pl.BlockSpec((1, tq, C), lambda b, qi: (b, qi, 0)),
            scratch_shapes=[
                pltpu.VMEM((HW, C), jnp.bfloat16),     # q  (per batch, resident)
                pltpu.VMEM((HW, C), jnp.bfloat16),     # k
                pltpu.VMEM((HW, C), jnp.bfloat16),     # v
            ],
        ),
        compiler_params=pltpu.CompilerParams(
            # batch axis parallel (feeds both v7x TensorCores when B >= 2); the q-tile axis
            # must be "arbitrary" because the QKV scratch is produced at qi == 0.
            dimension_semantics=("parallel", "arbitrary"),
            vmem_limit_bytes=vmem_limit),
        # Reuse the x_tok buffer for the output (residual is the last write).  x_tok is a
        # private temporary of this wrapper and is never read again after the kernel.
        input_output_aliases={0: 0},
    )(x_tok, gamma, beta, pool, w_qkv, b_qkv, wp, bp)

    # token-major -> NCHW
    return jnp.transpose(out_tok.reshape(B, H, W, C), (0, 3, 1, 2))


# --------------------------------------------------------------------------------------
# Init mirroring AttnBlock.initialize() and a pure-JAX reference for validation.
# --------------------------------------------------------------------------------------
def init_params(key, in_ch):
    def xavier_uniform(k, out_c, in_c, gain=1.0):
        bound = gain * (6.0 / (in_c + out_c)) ** 0.5
        return jax.random.uniform(k, (out_c, in_c, 1, 1), jnp.float32,
                                  minval=-bound, maxval=bound)

    k1, k2, k3, k4 = jax.random.split(key, 4)
    zeros = jnp.zeros((in_ch,), jnp.float32)
    return {
        "gn_gamma": jnp.ones((in_ch,), jnp.float32),
        "gn_beta": zeros,
        "wq": xavier_uniform(k1, in_ch, in_ch), "bq": zeros,
        "wk": xavier_uniform(k2, in_ch, in_ch), "bk": zeros,
        "wv": xavier_uniform(k3, in_ch, in_ch), "bv": zeros,
        # torch re-initializes proj.weight with gain=1e-5
        "wp": xavier_uniform(k4, in_ch, in_ch, gain=1e-5), "bp": zeros,
    }


def attn_block_reference(x, p):
    """Pure-JAX (f32) reference of the PyTorch forward."""
    B, C, H, W = x.shape
    HW = H * W
    gs = C // NUM_GROUPS
    xg = x.reshape(B, NUM_GROUPS, gs * H * W)
    mean = xg.mean(axis=-1, keepdims=True)
    var = xg.var(axis=-1, keepdims=True)
    h = ((xg - mean) / jnp.sqrt(var + EPS)).reshape(B, C, H, W)
    h = h * p["gn_gamma"][None, :, None, None] + p["gn_beta"][None, :, None, None]

    def conv1x1(t, w, b):
        return jnp.einsum("bchw,oc->bohw", t, w[:, :, 0, 0]) + b[None, :, None, None]

    q = conv1x1(h, p["wq"], p["bq"]).transpose(0, 2, 3, 1).reshape(B, HW, C)
    k = conv1x1(h, p["wk"], p["bk"]).reshape(B, C, HW)
    v = conv1x1(h, p["wv"], p["bv"]).transpose(0, 2, 3, 1).reshape(B, HW, C)
    w = jax.nn.softmax(jnp.einsum("bqc,bck->bqk", q, k) * (C ** -0.5), axis=-1)
    hh = jnp.einsum("bqk,bkc->bqc", w, v).reshape(B, H, W, C).transpose(0, 3, 1, 2)
    hh = conv1x1(hh, p["wp"], p["bp"])
    return x + hh


if __name__ == "__main__":
    # GroupNorm(32, C) requires C % 32 == 0; use C=128 so tiles are lane-dense (>=128 lanes).
    B, C, H, W = 2, 128, 8, 8
    key = jax.random.PRNGKey(0)
    kx, kp = jax.random.split(key)
    x = jax.random.normal(kx, (B, C, H, W), jnp.float32)
    params = init_params(kp, C)

    attn_fn = jax.jit(attn_block_pallas)

    # Module-faithful check (proj gain = 1e-5, residual-dominated output).
    out = jax.block_until_ready(attn_fn(x, params))
    ref = attn_block_reference(x, params)
    assert out.shape == (B, C, H, W)
    assert jnp.allclose(out, ref, atol=1e-3, rtol=1e-3), "mismatch vs reference"

    # Structural check with a full-strength output projection so the attention path is
    # visible in the output; loose tolerance because q/k/v/attention run in bf16 on the MXU.
    params_full = dict(params)
    params_full["wp"] = params["wp"] * 1e5   # undo the 1e-5 gain -> effective gain ~ 1.0
    out2 = jax.block_until_ready(attn_fn(x, params_full))
    ref2 = attn_block_reference(x, params_full)
    rel = jnp.linalg.norm(out2 - ref2) / jnp.linalg.norm(ref2)
    assert rel < 5e-2, f"relative error too large: {rel}"

    print("KERNEL_OK")
</pallas_src>

<mosaic_0001>
module attributes {stable_mosaic.version = 11 : i64} {
  func.func @_attn_block_kernel(%arg0: i32, %arg1: i32, %arg2: memref<1x64x128xf32, #tpu.memory_space<vmem>>, %arg3: memref<1x128xf32, #tpu.memory_space<vmem>>, %arg4: memref<1x128xf32, #tpu.memory_space<vmem>>, %arg5: memref<128x128xf32, #tpu.memory_space<vmem>>, %arg6: memref<128x384xbf16, #tpu.memory_space<vmem>>, %arg7: memref<1x384xf32, #tpu.memory_space<vmem>>, %arg8: memref<128x128xbf16, #tpu.memory_space<vmem>>, %arg9: memref<1x128xf32, #tpu.memory_space<vmem>>, %arg10: memref<1x64x128xf32, #tpu.memory_space<vmem>>, %arg11: memref<64x128xbf16, #tpu.memory_space<vmem>>, %arg12: memref<64x128xbf16, #tpu.memory_space<vmem>>, %arg13: memref<64x128xbf16, #tpu.memory_space<vmem>>) attributes {dimension_semantics = [#tpu.dimension_semantics<parallel>, #tpu.dimension_semantics<arbitrary>], iteration_bounds = array<i64: 2, 1>, scalar_prefetch = 0 : i64, scratch_operands = 3 : i64, tpu.core_type = #tpu.core_type<tc>, window_params = [{transform_indices = @transform_0, window_bounds = array<i64: 1, 64, 128>}, {pipeline_mode = #tpu.pipeline_mode<synchronous>, transform_indices = @transform_1, window_bounds = array<i64: 1, 128>}, {pipeline_mode = #tpu.pipeline_mode<synchronous>, transform_indices = @transform_2, window_bounds = array<i64: 1, 128>}, {pipeline_mode = #tpu.pipeline_mode<synchronous>, transform_indices = @transform_3, window_bounds = array<i64: 128, 128>}, {pipeline_mode = #tpu.pipeline_mode<synchronous>, transform_indices = @transform_4, window_bounds = array<i64: 128, 384>}, {pipeline_mode = #tpu.pipeline_mode<synchronous>, transform_indices = @transform_5, window_bounds = array<i64: 1, 384>}, {pipeline_mode = #tpu.pipeline_mode<synchronous>, transform_indices = @transform_6, window_bounds = array<i64: 128, 128>}, {pipeline_mode = #tpu.pipeline_mode<synchronous>, transform_indices = @transform_7, window_bounds = array<i64: 1, 128>}, {transform_indices = @transform_8, window_bounds = array<i64: 1, 64, 128>}]} {
    %c0_i32 = arith.constant 0 : i32
    %0 = arith.cmpi eq, %arg1, %c0_i32 : i32
    %1 = arith.extui %0 : i1 to i32
    %c0_i32_0 = arith.constant 0 : i32
    %2 = arith.cmpi ne, %1, %c0_i32_0 : i32
    scf.if %2 {
      %c0_18 = arith.constant 0 : index
      %c0_19 = arith.constant 0 : index
      %c0_20 = arith.constant 0 : index
      %35 = vector.load %arg2[%c0_18, %c0_19, %c0_20] : memref<1x64x128xf32, #tpu.memory_space<vmem>>, vector<1x64x128xf32>
      %36 = vector.shape_cast %35 : vector<1x64x128xf32> to vector<64x128xf32>
      %cst_21 = arith.constant dense<0.000000e+00> : vector<128xf32>
      %37 = vector.multi_reduction <add>, %36, %cst_21 [0] : vector<64x128xf32> to vector<128xf32>
      %38 = vector.shape_cast %37 : vector<128xf32> to vector<1x128xf32>
      %c0_22 = arith.constant 0 : index
      %c0_23 = arith.constant 0 : index
      %39 = vector.load %arg5[%c0_22, %c0_23] : memref<128x128xf32, #tpu.memory_space<vmem>>, vector<128x128xf32>
      %cst_24 = arith.constant dense<0.000000e+00> : vector<1x128xf32>
      %40 = tpu.matmul %38, %39, %cst_24 {dimension_numbers = #tpu.dot_dimension_numbers<[1], [0], [0], [1], [0, 0, 1, 1], [], []>} : vector<1x128xf32>, vector<128x128xf32>, vector<1x128xf32> -> vector<1x128xf32>
      %41 = vector.broadcast %40 : vector<1x128xf32> to vector<64x128xf32>
      %42 = arith.subf %36, %41 : vector<64x128xf32>
      %43 = arith.mulf %42, %42 : vector<64x128xf32>
      %cst_25 = arith.constant dense<0.000000e+00> : vector<128xf32>
      %44 = vector.multi_reduction <add>, %43, %cst_25 [0] : vector<64x128xf32> to vector<128xf32>
      %45 = vector.shape_cast %44 : vector<128xf32> to vector<1x128xf32>
      %c0_26 = arith.constant 0 : index
      %c0_27 = arith.constant 0 : index
      %46 = vector.load %arg5[%c0_26, %c0_27] : memref<128x128xf32, #tpu.memory_space<vmem>>, vector<128x128xf32>
      %cst_28 = arith.constant dense<0.000000e+00> : vector<1x128xf32>
      %47 = tpu.matmul %45, %46, %cst_28 {dimension_numbers = #tpu.dot_dimension_numbers<[1], [0], [0], [1], [0, 0, 1, 1], [], []>} : vector<1x128xf32>, vector<128x128xf32>, vector<1x128xf32> -> vector<1x128xf32>
      %cst_29 = arith.constant 9.99999974E-6 : f32
      %48 = vector.broadcast %cst_29 : f32 to vector<1x128xf32>
      %49 = arith.addf %47, %48 : vector<1x128xf32>
      %50 = math.rsqrt %49 : vector<1x128xf32>
      %51 = vector.broadcast %50 : vector<1x128xf32> to vector<64x128xf32>
      %52 = arith.mulf %42, %51 : vector<64x128xf32>
      %c0_30 = arith.constant 0 : index
      %c0_31 = arith.constant 0 : index
      %53 = vector.load %arg3[%c0_30, %c0_31] : memref<1x128xf32, #tpu.memory_space<vmem>>, vector<1x128xf32>
      %54 = vector.broadcast %53 : vector<1x128xf32> to vector<64x128xf32>
      %55 = arith.mulf %52, %54 : vector<64x128xf32>
      %c0_32 = arith.constant 0 : index
      %c0_33 = arith.constant 0 : index
      %56 = vector.load %arg4[%c0_32, %c0_33] : memref<1x128xf32, #tpu.memory_space<vmem>>, vector<1x128xf32>
      %57 = vector.broadcast %56 : vector<1x128xf32> to vector<64x128xf32>
      %58 = arith.addf %55, %57 : vector<64x128xf32>
      %59 = arith.truncf %58 : vector<64x128xf32> to vector<64x128xbf16>
      %c0_34 = arith.constant 0 : index
      %c0_35 = arith.constant 0 : index
      %60 = vector.load %arg6[%c0_34, %c0_35] : memref<128x384xbf16, #tpu.memory_space<vmem>>, vector<128x384xbf16>
      %cst_36 = arith.constant dense<0.000000e+00> : vector<64x384xf32>
      %61 = tpu.matmul %59, %60, %cst_36 {dimension_numbers = #tpu.dot_dimension_numbers<[1], [0], [0], [1], [0, 0, 1, 1], [], []>} : vector<64x128xbf16>, vector<128x384xbf16>, vector<64x384xf32> -> vector<64x384xf32>
      %c0_37 = arith.constant 0 : index
      %c0_38 = arith.constant 0 : index
      %62 = vector.load %arg7[%c0_37, %c0_38] : memref<1x384xf32, #tpu.memory_space<vmem>>, vector<1x384xf32>
      %63 = vector.broadcast %62 : vector<1x384xf32> to vector<64x384xf32>
      %64 = arith.addf %61, %63 : vector<64x384xf32>
      %65 = vector.extract_strided_slice %64 {offsets = [0, 0], sizes = [64, 128], strides = [1, 1]} : vector<64x384xf32> to vector<64x128xf32>
      %66 = arith.truncf %65 : vector<64x128xf32> to vector<64x128xbf16>
      %c0_39 = arith.constant 0 : index
      %c0_40 = arith.constant 0 : index
      %67 = vector.load %arg11[%c0_39, %c0_40] : memref<64x128xbf16, #tpu.memory_space<vmem>>, vector<64x128xbf16>
      tpu.vector_store %arg11[%c0_39, %c0_40], %66 {strides = array<i32>} : memref<64x128xbf16, #tpu.memory_space<vmem>>, vector<64x128xbf16>,
      %68 = vector.extract_strided_slice %64 {offsets = [0, 128], sizes = [64, 128], strides = [1, 1]} : vector<64x384xf32> to vector<64x128xf32>
      %69 = arith.truncf %68 : vector<64x128xf32> to vector<64x128xbf16>
      %c0_41 = arith.constant 0 : index
      %c0_42 = arith.constant 0 : index
      %70 = vector.load %arg12[%c0_41, %c0_42] : memref<64x128xbf16, #tpu.memory_space<vmem>>, vector<64x128xbf16>
      tpu.vector_store %arg12[%c0_41, %c0_42], %69 {strides = array<i32>} : memref<64x128xbf16, #tpu.memory_space<vmem>>, vector<64x128xbf16>,
      %71 = vector.extract_strided_slice %64 {offsets = [0, 256], sizes = [64, 128], strides = [1, 1]} : vector<64x384xf32> to vector<64x128xf32>
      %72 = arith.truncf %71 : vector<64x128xf32> to vector<64x128xbf16>
      %c0_43 = arith.constant 0 : index
      %c0_44 = arith.constant 0 : index
      %73 = vector.load %arg13[%c0_43, %c0_44] : memref<64x128xbf16, #tpu.memory_space<vmem>>, vector<64x128xbf16>
      tpu.vector_store %arg13[%c0_43, %c0_44], %72 {strides = array<i32>} : memref<64x128xbf16, #tpu.memory_space<vmem>>, vector<64x128xbf16>,
    } else {
    }
    %c64_i32 = arith.constant 64 : i32
    %3 = arith.muli %arg1, %c64_i32 : i32
    %4 = tpu.assume_multiple %3, 64 : i32
    %5 = arith.index_cast %4 : i32 to index
    %c0 = arith.constant 0 : index
    %6 = vector.load %arg11[%5, %c0] : memref<64x128xbf16, #tpu.memory_space<vmem>>, vector<64x128xbf16>
    %c0_1 = arith.constant 0 : index
    %c0_2 = arith.constant 0 : index
    %7 = vector.load %arg12[%c0_1, %c0_2] : memref<64x128xbf16, #tpu.memory_space<vmem>>, vector<64x128xbf16>
    %cst = arith.constant dense<0.000000e+00> : vector<64x64xf32>
    %8 = tpu.matmul %6, %7, %cst {dimension_numbers = #tpu.dot_dimension_numbers<[1], [1], [0], [0], [0, 0, 1, 0], [], []>} : vector<64x128xbf16>, vector<64x128xbf16>, vector<64x64xf32> -> vector<64x64xf32>
    %cst_3 = arith.constant dense<0xFF800000> : vector<64xf32>
    %9 = vector.multi_reduction <maximumf>, %8, %cst_3 [1] : vector<64x64xf32> to vector<64xf32>
    %10 = vector.shape_cast %9 : vector<64xf32> to vector<64x1xf32>
    %11 = vector.broadcast %10 : vector<64x1xf32> to vector<64x64xf32>
    %12 = arith.subf %8, %11 : vector<64x64xf32>
    %13 = math.exp %12 : vector<64x64xf32>
    %cst_4 = arith.constant dense<0.000000e+00> : vector<64xf32>
    %14 = vector.multi_reduction <add>, %13, %cst_4 [1] : vector<64x64xf32> to vector<64xf32>
    %15 = vector.shape_cast %14 : vector<64xf32> to vector<64x1xf32>
    %16 = arith.truncf %13 : vector<64x64xf32> to vector<64x64xbf16>
    %c0_5 = arith.constant 0 : index
    %c0_6 = arith.constant 0 : index
    %17 = vector.load %arg13[%c0_5, %c0_6] : memref<64x128xbf16, #tpu.memory_space<vmem>>, vector<64x128xbf16>
    %cst_7 = arith.constant dense<0.000000e+00> : vector<64x128xf32>
    %18 = tpu.matmul %16, %17, %cst_7 {dimension_numbers = #tpu.dot_dimension_numbers<[1], [0], [0], [1], [0, 0, 1, 1], [], []>} : vector<64x64xbf16>, vector<64x128xbf16>, vector<64x128xf32> -> vector<64x128xf32>
    %19 = tpu.reciprocal %15 {approx = true} : vector<64x1xf32> -> vector<64x1xf32>
    %20 = vector.broadcast %19 : vector<64x1xf32> to vector<64x128xf32>
    %21 = arith.mulf %18, %20 : vector<64x128xf32>
    %22 = arith.truncf %21 : vector<64x128xf32> to vector<64x128xbf16>
    %c0_8 = arith.constant 0 : index
    %c0_9 = arith.constant 0 : index
    %23 = vector.load %arg8[%c0_8, %c0_9] : memref<128x128xbf16, #tpu.memory_space<vmem>>, vector<128x128xbf16>
    %cst_10 = arith.constant dense<0.000000e+00> : vector<64x128xf32>
    %24 = tpu.matmul %22, %23, %cst_10 {dimension_numbers = #tpu.dot_dimension_numbers<[1], [0], [0], [1], [0, 0, 1, 1], [], []>} : vector<64x128xbf16>, vector<128x128xbf16>, vector<64x128xf32> -> vector<64x128xf32>
    %c0_11 = arith.constant 0 : index
    %c0_12 = arith.constant 0 : index
    %25 = vector.load %arg9[%c0_11, %c0_12] : memref<1x128xf32, #tpu.memory_space<vmem>>, vector<1x128xf32>
    %26 = vector.broadcast %25 : vector<1x128xf32> to vector<64x128xf32>
    %27 = arith.addf %24, %26 : vector<64x128xf32>
    %c0_13 = arith.constant 0 : index
    %28 = arith.index_cast %4 : i32 to index
    %c0_14 = arith.constant 0 : index
    %29 = vector.load %arg2[%c0_13, %28, %c0_14] : memref<1x64x128xf32, #tpu.memory_space<vmem>>, vector<1x64x128xf32>
    %30 = vector.shape_cast %29 : vector<1x64x128xf32> to vector<64x128xf32>
    %31 = arith.addf %30, %27 : vector<64x128xf32>
    %c0_15 = arith.constant 0 : index
    %c0_16 = arith.constant 0 : index
    %c0_17 = arith.constant 0 : index
    %32 = vector.load %arg10[%c0_15, %c0_16, %c0_17] : memref<1x64x128xf32, #tpu.memory_space<vmem>>, vector<1x64x128xf32>
    %33 = vector.shape_cast %32 : vector<1x64x128xf32> to vector<64x128xf32>
    %34 = vector.shape_cast %31 : vector<64x128xf32> to vector<1x64x128xf32>
    tpu.vector_store %arg10[%c0_15, %c0_16, %c0_17], %34 {strides = array<i32>} : memref<1x64x128xf32, #tpu.memory_space<vmem>>, vector<1x64x128xf32>,
    return
  }
  func.func @transform_0(%arg0: i32, %arg1: i32) -> (i32, i32, i32) {
    %c0_i32 = arith.constant 0 : i32
    %c0_i32_0 = arith.constant 0 : i32
    %c0_i32_1 = arith.constant 0 : i32
    return %arg0, %c0_i32, %c0_i32_0 : i32, i32, i32
  }
  func.func @transform_1(%arg0: i32, %arg1: i32) -> (i32, i32) {
    %c0_i32 = arith.constant 0 : i32
    %c0_i32_0 = arith.constant 0 : i32
    %c0_i32_1 = arith.constant 0 : i32
    return %c0_i32, %c0_i32_0 : i32, i32
  }
  func.func @transform_2(%arg0: i32, %arg1: i32) -> (i32, i32) {
    %c0_i32 = arith.constant 0 : i32
    %c0_i32_0 = arith.constant 0 : i32
    %c0_i32_1 = arith.constant 0 : i32
    return %c0_i32, %c0_i32_0 : i32, i32
  }
  func.func @transform_3(%arg0: i32, %arg1: i32) -> (i32, i32) {
    %c0_i32 = arith.constant 0 : i32
    %c0_i32_0 = arith.constant 0 : i32
    %c0_i32_1 = arith.constant 0 : i32
    return %c0_i32, %c0_i32_0 : i32, i32
  }
  func.func @transform_4(%arg0: i32, %arg1: i32) -> (i32, i32) {
    %c0_i32 = arith.constant 0 : i32
    %c0_i32_0 = arith.constant 0 : i32
    %c0_i32_1 = arith.constant 0 : i32
    return %c0_i32, %c0_i32_0 : i32, i32
  }
  func.func @transform_5(%arg0: i32, %arg1: i32) -> (i32, i32) {
    %c0_i32 = arith.constant 0 : i32
    %c0_i32_0 = arith.constant 0 : i32
    %c0_i32_1 = arith.constant 0 : i32
    return %c0_i32, %c0_i32_0 : i32, i32
  }
  func.func @transform_6(%arg0: i32, %arg1: i32) -> (i32, i32) {
    %c0_i32 = arith.constant 0 : i32
    %c0_i32_0 = arith.constant 0 : i32
    %c0_i32_1 = arith.constant 0 : i32
    return %c0_i32, %c0_i32_0 : i32, i32
  }
  func.func @transform_7(%arg0: i32, %arg1: i32) -> (i32, i32) {
    %c0_i32 = arith.constant 0 : i32
    %c0_i32_0 = arith.constant 0 : i32
    %c0_i32_1 = arith.constant 0 : i32
    return %c0_i32, %c0_i32_0 : i32, i32
  }
  func.func @transform_8(%arg0: i32, %arg1: i32) -> (i32, i32, i32) {
    %c0_i32 = arith.constant 0 : i32
    %c0_i32_0 = arith.constant 0 : i32
    return %arg0, %arg1, %c0_i32 : i32, i32, i32
  }
}

</mosaic_0001>

<bundles_post_ra>
// kernel: attn_block_pallas.1
= control target key start
LH: loop header
LB: loop body
LE: loop exit
PB: predicated region body
PF: predicated region fallthrough
CT: control target
= control target key end

     0   :  { %s2202_s27 = smov 0   ;;  %s2204_s28 = smov 0   ;;  %s2584_s0 = inlined_call_operand.vmem [shape: f32[2,64,128], index: 0, kind: input, shape index: {}, may-alias: {0,8}]   ;;  %s2585_s1 = inlined_call_operand.vmem [shape: f32[1,128], index: 1, kind: input, shape index: {}]   ;;  %s2586_s2 = inlined_call_operand.vmem [shape: f32[1,128], index: 2, kind: input, shape index: {}]   ;;  %s2587_s3 = inlined_call_operand.vmem [shape: f32[128,128], index: 3, kind: input, shape index: {}]   ;;  %s2588_s4 = inlined_call_operand.vmem [shape: bf16[128,384], index: 4, kind: input, shape index: {}]   ;;  %s2589_s5 = inlined_call_operand.vmem [shape: f32[1,384], index: 5, kind: input, shape index: {}]   ;;  %s2590_s6 = inlined_call_operand.vmem [shape: bf16[128,128], index: 6, kind: input, shape index: {}]   ;;  %s2591_s7 = inlined_call_operand.vmem [shape: f32[1,128], index: 7, kind: input, shape index: {}]   ;;  %s2592_s8 = inlined_call_operand.vmem [shape: f32[2,64,128], index: 8, kind: output, shape index: {}, may-alias: {0,8}]  }
   0x1   :  { %s2206_s29 = smov 0  }
   0x2 LB: > { %s30_s30 = sadd.s32 1, %s2148_s28  ;;  %p1616_p0 = scmp.ge.s32.totalorder %s2152_s29, 1  ;;  %s2152_s29 = sphi %s2206_s29, %s18_s29   ;;  %s2148_s28 = sphi %s2204_s28, %s2594_s28   ;;  %s2144_s27 = sphi %s2202_s27, %s2593_s27  }
   0x3   : > { %p32_p1 = scmp.ge.s32.totalorder %s30_s30, 2  ;;  %p276_p2 = scmp.lt.s32.totalorder %s2152_s29, 3 }
   0x5   : > { %s2596_s30 = smov (%p32_p1, %s30_s30), 0  ;;  %p277_p3 = pnand %p1616_p0, %p276_p2 }
   0x6   : > { %p314_p4 = scmp.lt.s32.totalorder (!%p277_p3), %s2144_s27, 1 }
   0x7   : > { %280 = sbr.rel (%p277_p3) target bundleno = 1534 (0x5fe), region = 52 }
   0xc   : > { %v370_v0 = vld [vmem:[%s2587_s3 + $0x78] sm:$0xff]  ;;  %v2154_v1 = vmov 0.0   ;;  %v369_v2 = vld [vmem:[%s2587_s3 + $0x70] sm:$0xff]  ;;  %vm2155_vm0 = vmmov 0   ;;  %s2598_s27 = smov (!%p314_p4, %s2144_s27), 1  ;;  %v368_v3 = vld [vmem:[%s2587_s3 + $0x68] sm:$0xff]  ;;  %v441_v43 = vlaneseq }
   0xd   : > { %1867 = vmatprep.subr.mxu0 %v2154_v1  ;;  %1899 = vmatprep.mubr.msk.f32.mxu0 %vm2155_vm0, %v2154_v1  ;;  %s1698_s15 = sshll.u32 %s2598_s27, 6  ;;  %v367_v4 = vld [vmem:[%s2587_s3 + $0x60] sm:$0xff]  ;;  %v366_v8 = vld [vmem:[%s2587_s3 + $0x58] sm:$0xff]  ;;  %v365_v9 = vld [vmem:[%s2587_s3 + $0x50] sm:$0xff]  ;;  %vm1160_vm1 = vcmask 523264  }
   0xe   : > { %1868 = vmatpush3.msra.mxu0 %v370_v0  ;;  %1902 = vmatprep.subr.mxu1 %v2154_v1  ;;  %s2247_s20 = scalar_lea.vmem %s2584_s0, %s1698_s15  ;;  %v364_v13 = vld [vmem:[%s2587_s3 + $0x48] sm:$0xff]  ;;  %v363_v16 = vld [vmem:[%s2587_s3 + $0x40] sm:$0xff]  ;;  %v362_v19 = vld [vmem:[%s2587_s3 + $0x38] sm:$0xff]  ;;  %v2361_v44 = vshrl.u32 %v441_v43, 7  ;;  %s2562_s23 = scalar_lea.vmem %s2592_s8, %s1698_s15 }
   0xf   : > { %1869 = vmatprep.subr.mxu0 %v2154_v1  ;;  %1903 = vmatpush3.msra.mxu1 %v370_v0  ;;  %v2250_v5 = vld [vmem:[%s2247_s20] sm:$0xff]  ;;  %v2253_v6 = vld [vmem:[%s2247_s20 + $0x8] sm:$0xff]  ;;  %v2256_v7 = vld [vmem:[%s2247_s20 + $0x10] sm:$0xff] }
  0x10   : > { %1870 = vmatpush3.msra.mxu0 %v369_v2  ;;  %1904 = vmatprep.subr.mxu1 %v2154_v1  ;;  %v342_v10 = vadd.f32 %v2253_v6, %v2250_v5  ;;  %v2269_v11 = vld [vmem:[%s2247_s20 + $0x18] sm:$0xff]  ;;  %v2272_v12 = vld [vmem:[%s2247_s20 + $0x20] sm:$0xff]  ;;  %v2281_v15 = vld [vmem:[%s2247_s20 + $0x28] sm:$0xff]  ;;  %v2364_v45 = vsub.s32 0, %v2361_v44 }
  0x11   : > { %1871 = vmatprep.subr.mxu0 %v2154_v1  ;;  %1905 = vmatpush3.msra.mxu1 %v369_v2  ;;  %v2290_v18 = vld [vmem:[%s2247_s20 + $0x30] sm:$0xff]  ;;  %v2299_v21 = vld [vmem:[%s2247_s20 + $0x38] sm:$0xff]  ;;  %v360_v24 = vld [vmem:[%s2587_s3 + $0x28] sm:$0xff] }
  0x12   : > { %1872 = vmatpush3.msra.mxu0 %v368_v3  ;;  %1906 = vmatprep.subr.mxu1 %v2154_v1  ;;  %v343_v14 = vadd.f32 %v342_v10, %v2256_v7  ;;  %v361_v22 = vld [vmem:[%s2587_s3 + $0x30] sm:$0xff]  ;;  %v359_v26 = vld [vmem:[%s2587_s3 + $0x20] sm:$0xff]  ;;  %v358_v28 = vld [vmem:[%s2587_s3 + $0x18] sm:$0xff] }
  0x13   : > { %1873 = vmatprep.subr.mxu0 %v2154_v1  ;;  %1907 = vmatpush3.msra.mxu1 %v368_v3  ;;  %v357_v31 = vld [vmem:[%s2587_s3 + $0x10] sm:$0xff]  ;;  %v356_v33 = vld [vmem:[%s2587_s3 + $0x8] sm:$0xff]  ;;  %v355_v35 = vld [vmem:[%s2587_s3] sm:$0xff] }
  0x14   : > { %1874 = vmatpush3.msra.mxu0 %v367_v4  ;;  %1908 = vmatprep.subr.mxu1 %v2154_v1  ;;  %v344_v17 = vadd.f32 %v343_v14, %v2269_v11  ;;  %v2044_v38 = vld [vmem:[%s2588_s4 + $0xa8] ss:$12 sps:$4 sm:$0xff]   ;;  %v2046_v39 = vld [vmem:[%s2588_s4 + $0xac] ss:$12 sps:$4 sm:$0xff]   ;;  %v2047_v40 = vld [vmem:[%s2588_s4 + $0xb0] ss:$12 sps:$4 sm:$0xff]  }
  0x15   : > { %1875 = vmatprep.subr.mxu0 %v2154_v1  ;;  %1909 = vmatpush3.msra.mxu1 %v367_v4  ;;  %v2050_v41 = vld [vmem:[%s2588_s4 + $0x94] ss:$12 sps:$4 sm:$0xff]   ;;  %v2048_v42 = vld [vmem:[%s2588_s4 + $0x90] ss:$12 sps:$4 sm:$0xff]   ;;  %v2051_v14 = vld [vmem:[%s2588_s4 + $0x98] ss:$12 sps:$4 sm:$0xff]  }
  0x16   : > { %1876 = vmatpush3.msra.mxu0 %v366_v8  ;;  %1910 = vmatprep.subr.mxu1 %v2154_v1  ;;  %v345_v20 = vadd.f32 %v344_v17, %v2272_v12  ;;  %v2055_v17 = vld [vmem:[%s2588_s4 + $0x80] ss:$12 sps:$4 sm:$0xff]  }
  0x17   : > { %1877 = vmatprep.subr.mxu0 %v2154_v1  ;;  %1911 = vmatpush3.msra.mxu1 %v366_v8 }
  0x18   : > { %1878 = vmatpush3.msra.mxu0 %v365_v9  ;;  %1912 = vmatprep.subr.mxu1 %v2154_v1  ;;  %v346_v23 = vadd.f32 %v345_v20, %v2281_v15  ;;  %v2059_v20 = vld [vmem:[%s2588_s4 + $0x68] ss:$12 sps:$4 sm:$0xff]  }
  0x19   : > { %1879 = vmatprep.subr.mxu0 %v2154_v1  ;;  %1913 = vmatpush3.msra.mxu1 %v365_v9 }
  0x1a   : > { %1880 = vmatpush3.msra.mxu0 %v364_v13  ;;  %1914 = vmatprep.subr.mxu1 %v2154_v1  ;;  %v347_v25 = vadd.f32 %v346_v23, %v2290_v18  ;;  %v2063_v23 = vld [vmem:[%s2588_s4 + $0x50] ss:$12 sps:$4 sm:$0xff]  }
  0x1b   : > { %1881 = vmatprep.subr.mxu0 %v2154_v1  ;;  %1915 = vmatpush3.msra.mxu1 %v364_v13 }
  0x1c   : > { %1882 = vmatpush3.msra.mxu0 %v363_v16  ;;  %1916 = vmatprep.subr.mxu1 %v2154_v1  ;;  %v348_v27 = vadd.f32 %v347_v25, %v2299_v21  ;;  %v2064_v25 = vld [vmem:[%s2588_s4 + $0x30] ss:$12 sps:$4 sm:$0xff]  }
  0x1d   : > { %1883 = vmatprep.subr.mxu0 %v2154_v1  ;;  %1917 = vmatpush3.msra.mxu1 %v363_v16  ;;  %v2052_v16 = vld [vmem:[%s2588_s4 + $0x78] ss:$12 sps:$4 sm:$0xff]  }
  0x1e   : > { %1884 = vmatpush3.msra.mxu0 %v362_v19  ;;  %1918 = vmatprep.subr.mxu1 %v2154_v1  ;;  %v349_v29 = vrot.slane %v348_v27, 4 }
  0x1f   : > { %1885 = vmatprep.subr.mxu0 %v2154_v1  ;;  %1919 = vmatpush3.msra.mxu1 %v362_v19  ;;  %v2056_v19 = vld [vmem:[%s2588_s4 + $0x60] ss:$12 sps:$4 sm:$0xff]  }
  0x20   : > { %1886 = vmatpush3.msra.mxu0 %v361_v22  ;;  %1920 = vmatprep.subr.mxu1 %v2154_v1  ;;  %v350_v30 = vadd.f32 %v349_v29, %v348_v27  ;;  %v2068_v27 = vld [vmem:[%s2588_s4 + $0x18] ss:$12 sps:$4 sm:$0xff]   ;;  %v2071_v29 = vld [vmem:[%s2588_s4 + $0x20] ss:$12 sps:$4 sm:$0xff]  }
  0x21   : > { %1887 = vmatprep.subr.mxu0 %v2154_v1  ;;  %1921 = vmatpush3.msra.mxu1 %v361_v22  ;;  %v2060_v22 = vld [vmem:[%s2588_s4 + $0x48] ss:$12 sps:$4 sm:$0xff]  }
  0x22   : > { %1888 = vmatpush3.msra.mxu0 %v360_v24  ;;  %1922 = vmatprep.subr.mxu1 %v2154_v1  ;;  %v351_v32 = vrot.slane %v350_v30, 2 }
  0x23   : > { %1889 = vmatprep.subr.mxu0 %v2154_v1  ;;  %1923 = vmatpush3.msra.mxu1 %v360_v24  ;;  %v2066_v24 = vld [vmem:[%s2588_s4 + $0x34] ss:$12 sps:$4 sm:$0xff]  }
  0x24   : > { %1890 = vmatpush3.msra.mxu0 %v359_v26  ;;  %1924 = vmatprep.subr.mxu1 %v2154_v1  ;;  %v352_v34 = vadd.f32 %v351_v32, %v350_v30  ;;  %v2074_v30 = vld [vmem:[%s2588_s4 + $0x4] ss:$12 sps:$4 sm:$0xff]   ;;  %v2156_v32 = vmov 0  }
  0x25   : > { %1891 = vmatprep.subr.mxu0 %v2154_v1  ;;  %1925 = vmatpush3.msra.mxu1 %v359_v26  ;;  %v2067_v26 = vld [vmem:[%s2588_s4 + $0x38] ss:$12 sps:$4 sm:$0xff]  }
  0x26   : > { %1892 = vmatpush3.msra.mxu0 %v358_v28  ;;  %1926 = vmatprep.subr.mxu1 %v2154_v1  ;;  %v353_v36 = vrot.slane %v352_v34, 1 }
  0x27   : > { %1893 = vmatprep.subr.mxu0 %v2154_v1  ;;  %1927 = vmatpush3.msra.mxu1 %v358_v28  ;;  %v2070_v28 = vld [vmem:[%s2588_s4 + $0x1c] ss:$12 sps:$4 sm:$0xff]  }
  0x28   : > { %1894 = vmatpush3.msra.mxu0 %v357_v31  ;;  %1928 = vmatprep.subr.mxu1 %v2154_v1  ;;  %v354_v37 = vadd.f32 %v353_v36, %v352_v34 }
  0x29   : > { %1895 = vmatprep.subr.mxu0 %v2154_v1  ;;  %1929 = vmatpush3.msra.mxu1 %v357_v31  ;;  %v2075_v31 = vld [vmem:[%s2588_s4 + $0x8] ss:$12 sps:$4 sm:$0xff]  }
  0x2a   : > { %1896 = vmatpush3.msra.mxu0 %v356_v33  ;;  %1930 = vmatprep.subr.mxu1 %v2154_v1 }
  0x2b   : > { %1897 = vmatprep.subr.mxu0 %v2154_v1  ;;  %1931 = vmatpush3.msra.mxu1 %v356_v33  ;;  %v2072_v33 = vld [vmem:[%s2588_s4] ss:$12 sps:$4 sm:$0xff]  }
  0x2c   : > { %1898 = vmatpush3.msra.mxu0 %v355_v35  ;;  %1932 = vmatprep.subr.mxu1 %v2154_v1 }
  0x2d   : > { %1900 = vmatmul.mubr.f32.vlgmr.msra.gmra.mxu0 %v354_v37  ;;  %1933 = vmatpush3.msra.mxu1 %v355_v35 }
  0x2e   : > { %1934 = vmatprep.mubr.msk.f32.mxu1 %vm2155_vm0, %v2154_v1  ;;  %768 = vmatprep.subr.bf16.mxu0 %v2046_v39  ;;  %v1621_v39 = vld [vmem:[%s2585_s1] ss:$0 sm:$0xff] }
  0x2f   : > { %1937 = vmatprep.subr.bf16.mxu1 %v2047_v40  ;;  %769 = vmatpush1.bf16.msra.mxu0 %v2044_v38 }
  0x30   : > { %770 = vmatprep.subr.bf16.mxu0 %v2050_v41  ;;  %800 = vmatprep.mubr.bf16.mxu0 %v2156_v32 }
  0x33   : > { %771 = vmatpush1.bf16.msra.mxu0 %v2048_v42 }
  0xed   : > { %v437_v46 = vpop.f32.mrf.mxu0 }
  0xee   : > { %v444_v47 = vrot.slane %v437_v46, %v2364_v45  ;;  %v1622_v46 = vld [vmem:[%s2586_s2] ss:$0 sm:$0xff] }
  0xef   : > { %v1901_v48 = vpop.f32.mrf.mxu0 }
  0xf0   : > { %v2368_v49 = vsub.f32 %v2250_v5, %v444_v47  ;;  %v2371_v50 = vsub.f32 %v2253_v6, %v444_v47  ;;  %v2374_v51 = vsub.f32 %v2256_v7, %v444_v47  ;;  %v2377_v52 = vsub.f32 %v2269_v11, %v444_v47 }
  0xf1   : > { %v2384_v55 = vsub.f32 %v2272_v12, %v444_v47  ;;  %v2389_v58 = vsub.f32 %v2281_v15, %v444_v47  ;;  %v2394_v61 = vsub.f32 %v2290_v18, %v444_v47  ;;  %v2399_v0 = vsub.f32 %v2299_v21, %v444_v47  ;;  %v2054_v15 = vld [vmem:[%s2588_s4 + $0x7c] ss:$12 sps:$4 sm:$0xff]   ;;  %v2058_v18 = vld [vmem:[%s2588_s4 + $0x64] ss:$12 sps:$4 sm:$0xff]   ;;  %v2062_v21 = vld [vmem:[%s2588_s4 + $0x4c] ss:$12 sps:$4 sm:$0xff]  }
  0xf2   : > { %v453_v53 = vmul.f32 %v2368_v49, %v2368_v49  ;;  %v454_v54 = vmul.f32 %v2371_v50, %v2371_v50  ;;  %v455_v56 = vmul.f32 %v2374_v51, %v2374_v51  ;;  %v456_v59 = vmul.f32 %v2377_v52, %v2377_v52  ;;  %772 = vmatprep.subr.bf16.mxu0 %v2054_v15 }
  0xf3   : > { %v457_v62 = vmul.f32 %v2384_v55, %v2384_v55  ;;  %v458_v1 = vmul.f32 %v2389_v58, %v2389_v58  ;;  %v459_v3 = vmul.f32 %v2394_v61, %v2394_v61  ;;  %v460_v5 = vmul.f32 %v2399_v0, %v2399_v0  ;;  %773 = vmatpush1.bf16.msra.mxu0 %v2052_v16 }
  0xf4   : > { %v461_v57 = vadd.f32 %v454_v54, %v453_v53  ;;  %774 = vmatprep.subr.bf16.mxu0 %v2058_v18 }
  0xf6   : > { %v462_v60 = vadd.f32 %v461_v57, %v455_v56 }
  0xf7   : > { %775 = vmatpush1.bf16.msra.mxu0 %v2056_v19 }
  0xf8   : > { %v463_v63 = vadd.f32 %v462_v60, %v456_v59  ;;  %776 = vmatprep.subr.bf16.mxu0 %v2062_v21 }
  0xfa   : > { %v464_v2 = vadd.f32 %v463_v63, %v457_v62 }
  0xfb   : > { %777 = vmatpush1.bf16.msra.mxu0 %v2060_v22 }
  0xfc   : > { %v465_v4 = vadd.f32 %v464_v2, %v458_v1  ;;  %778 = vmatprep.subr.bf16.mxu0 %v2066_v24 }
  0xfe   : > { %v466_v6 = vadd.f32 %v465_v4, %v459_v3 }
  0xff   : > { %779 = vmatpush1.bf16.msra.mxu0 %v2064_v25 }
 0x100   : > { %v467_v7 = vadd.f32 %v466_v6, %v460_v5  ;;  %780 = vmatprep.subr.bf16.mxu0 %v2070_v28 }
 0x102   : > { %v468_v8 = vrot.slane %v467_v7, 4 }
 0x103   : > { %781 = vmatpush1.bf16.msra.mxu0 %v2068_v27 }
 0x104   : > { %v469_v9 = vadd.f32 %v468_v8, %v467_v7  ;;  %782 = vmatprep.subr.bf16.mxu0 %v2074_v30  ;;  %v635_v8 = vsub.s32 2, %v2361_v44 }
 0x106   : > { %v470_v10 = vrot.slane %v469_v9, 2 }
 0x107   : > { %783 = vmatpush1.bf16.msra.mxu0 %v2072_v33 }
 0x108   : > { %v471_v11 = vadd.f32 %v470_v10, %v469_v9  ;;  %v631_v9 = vsub.s32 1, %v2361_v44 }
 0x10a   : > { %v472_v12 = vrot.slane %v471_v11, 1 }
 0x10c   : > { %v473_v13 = vadd.f32 %v472_v12, %v471_v11 }
 0x10e   : > { %1935 = vmatmul.mubr.f32.vlgmr.msra.gmra.mxu1 %v473_v13 }
 0x10f   : > { %1938 = vmatpush3.bf16.msra.mxu1 %v2047_v40 }
 0x110   : > { %1939 = vmatprep.subr.bf16.mxu1 %v2051_v14 }
 0x113   : > { %1940 = vmatpush3.bf16.msra.mxu1 %v2051_v14 }
 0x114   : > { %1941 = vmatprep.subr.bf16.mxu1 %v2055_v17 }
 0x117   : > { %1942 = vmatpush3.bf16.msra.mxu1 %v2055_v17 }
 0x118   : > { %1943 = vmatprep.subr.bf16.mxu1 %v2059_v20 }
 0x11b   : > { %1944 = vmatpush3.bf16.msra.mxu1 %v2059_v20 }
 0x11c   : > { %1945 = vmatprep.subr.bf16.mxu1 %v2063_v23 }
 0x11f   : > { %1946 = vmatpush3.bf16.msra.mxu1 %v2063_v23 }
 0x120   : > { %1947 = vmatprep.subr.bf16.mxu1 %v2067_v26 }
 0x123   : > { %1948 = vmatpush3.bf16.msra.mxu1 %v2067_v26 }
 0x124   : > { %1949 = vmatprep.subr.bf16.mxu1 %v2071_v29 }
 0x127   : > { %1950 = vmatpush3.bf16.msra.mxu1 %v2071_v29 }
 0x128   : > { %1951 = vmatprep.subr.bf16.mxu1 %v2075_v31 }
 0x12b   : > { %1952 = vmatpush3.bf16.msra.mxu1 %v2075_v31 }
 0x1ce   : > { %v540_v34 = vpop.f32.mrf.mxu1 }
 0x1cf   : > { %v541_v35 = vadd.f32 1e-05, %v540_v34 }
 0x1d0   : > { %v1936_v36 = vpop.f32.mrf.mxu1 }
 0x1d1   : > { %2096 = vrsqrt.f32 %v541_v35 }
 0x1de   : > { %v2097_v37 = vpop.eup %2096 }
 0x1df   : > { %v548_v38 = vrot.slane %v2097_v37, %v2364_v45 }
 0x1e1   : > { %v549_v40 = vmul.f32 %v548_v38, %v2368_v49  ;;  %v550_v41 = vmul.f32 %v548_v38, %v2371_v50  ;;  %v551_v42 = vmul.f32 %v548_v38, %v2374_v51  ;;  %v552_v43 = vmul.f32 %v548_v38, %v2377_v52 }
 0x1e2   : > { %v553_v47 = vmul.f32 %v548_v38, %v2384_v55  ;;  %v554_v48 = vmul.f32 %v548_v38, %v2389_v58  ;;  %v555_v50 = vmul.f32 %v548_v38, %v2394_v61  ;;  %v556_v51 = vmul.f32 %v548_v38, %v2399_v0  ;;  %v623_v0 = vld [vmem:[%s2589_s5] sm:$0x7] }
 0x1e3   : > { %v564_v53 = vmul.f32 %v1621_v39, %v549_v40  ;;  %v565_v54 = vmul.f32 %v1621_v39, %v550_v41  ;;  %v566_v56 = vmul.f32 %v1621_v39, %v551_v42  ;;  %v567_v57 = vmul.f32 %v1621_v39, %v552_v43 }
 0x1e4   : > { %v568_v59 = vmul.f32 %v1621_v39, %v553_v47  ;;  %v569_v49 = vmul.f32 %v1621_v39, %v554_v48  ;;  %v570_v4 = vmul.f32 %v1621_v39, %v555_v50  ;;  %v571_v58 = vmul.f32 %v1621_v39, %v556_v51 }
 0x1e5   : > { %v579_v60 = vadd.f32 %v1622_v46, %v564_v53  ;;  %v580_v52 = vadd.f32 %v1622_v46, %v565_v54  ;;  %v581_v62 = vadd.f32 %v1622_v46, %v566_v56  ;;  %v582_v63 = vadd.f32 %v1622_v46, %v567_v57 }
 0x1e6   : > { %v583_v1 = vadd.f32 %v1622_v46, %v568_v59  ;;  %v584_v2 = vadd.f32 %v1622_v46, %v569_v49  ;;  %v585_v6 = vadd.f32 %v1622_v46, %v570_v4  ;;  %v586_v61 = vadd.f32 %v1622_v46, %v571_v58 }
 0x1e7   : > { %v587_v3 = vpack.c.bf16 %v580_v52, %v579_v60  ;;  %v588_v55 = vpack.c.bf16 %v582_v63, %v581_v62  ;;  %v2485_v11 = vrot.slane %v623_v0, %v2364_v45  ;;  %v636_v13 = vrot.slane %v623_v0, %v635_v8 }
 0x1e8   : > { %v589_v5 = vpack.c.bf16 %v584_v2, %v583_v1  ;;  %v590_v7 = vpack.c.bf16 %v586_v61, %v585_v6  ;;  %v2487_v15 = vrot.slane %v623_v0, %v631_v9 }
 0x1e9   : > { %801 = vmatmul.mubr.bf16.vlgmr.msra.gmra.mxu0 %v587_v3  ;;  %1953 = vmatprep.mubr.bf16.mxu1 %v587_v3 }
 0x1ea   : > { %1954 = vmatmul.mubr.bf16.vlgmr.msra.gmra.mxu1 %v588_v55  ;;  %810 = vmatprep.mubr.bf16.mxu0 %v2156_v32 }
 0x1eb   : > { %1957 = vmatprep.mubr.bf16.mxu1 %v589_v5 }
 0x1f1   : > { %811 = vmatmul.mubr.bf16.gmra.mxu0 %v588_v55 }
 0x1f2   : > { %1958 = vmatmul.mubr.bf16.gmra.mxu1 %v590_v7  ;;  %820 = vmatprep.mubr.bf16.mxu0 %v2156_v32 }
 0x1f9   : > { %821 = vmatmul.mubr.bf16.gmra.mxu0 %v589_v5 }
 0x1fa   : > { %830 = vmatprep.mubr.bf16.mxu0 %v2156_v32 }
 0x201   : > { %831 = vmatmul.mubr.bf16.gmra.mxu0 %v590_v7 }
 0x2a9   : > { %v802_v10 = vpop.f32.mrf.mxu0 }
 0x2aa   : > { %v1955_v12 = vpop.f32.mrf.mxu1  ;;  %v803_v18 = vadd.f32 %v802_v10, %v2485_v11 }
 0x2ab   : > { %v804_v14 = vpop.f32.mrf.mxu0  ;;  %v884_v21 = vadd.f32 %v1955_v12, %v636_v13 }
 0x2ac   : > { %v875_v16 = vpop.f32.mrf.mxu1  ;;  %v805_v44 = vadd.f32 %v804_v14, %v2487_v15 }
 0x2ad   : > { %v806_v17 = vpop.f32.mrf.mxu0  ;;  %v876_v26 = vadd.f32 %v875_v16, %v636_v13 }
 0x2ae   : > { %v807_v19 = vadd.f32 %v806_v17, %v2485_v11  ;;  %v1956_v20 = vpop.f32.mrf.mxu1 }
 0x2af   : > { %v887_v22 = vadd.f32 %v1956_v20, %v636_v13  ;;  %v808_v23 = vpop.f32.mrf.mxu0 }
 0x2b0   : > { %v1727_v24 = vpack.c.bf16 %v807_v19, %v803_v18  ;;  %v809_v45 = vadd.f32 %v808_v23, %v2487_v15  ;;  %v878_v25 = vpop.f32.mrf.mxu1 }
 0x2b1   : > { %v1772_v27 = vpack.c.bf16 %v887_v22, %v884_v21  ;;  %v879_v28 = vadd.f32 %v878_v25, %v636_v13  ;;  %v812_v29 = vpop.f32.mrf.mxu0 }
 0x2b2   : > { %1728 = vst [vmem:[#allocation2] sm:$0xff] %v1727_v24   ;;  %v1747_v30 = vpack.c.bf16 %v809_v45, %v805_v44  ;;  %v1959_v31 = vpop.f32.mrf.mxu1  ;;  %v813_v36 = vadd.f32 %v812_v29, %v2485_v11 }
 0x2b3   : > { %1790 = vst [vmem:[#allocation4 + $0x8] sm:$0xff] %v1772_v27   ;;  %v1767_v32 = vpack.c.bf16 %v879_v28, %v876_v26  ;;  %v814_v33 = vpop.f32.mrf.mxu0  ;;  %v900_v39 = vadd.f32 %v1959_v31, %v636_v13 }
 0x2b4   : > { %1748 = vst [vmem:[#allocation3] sm:$0xff] %v1747_v30   ;;  %v891_v34 = vpop.f32.mrf.mxu1  ;;  %v815_v42 = vadd.f32 %v814_v33, %v2487_v15 }
 0x2b5   : > { %1768 = vst [vmem:[#allocation4] sm:$0xff] %v1767_v32   ;;  %v816_v35 = vpop.f32.mrf.mxu0  ;;  %v892_v48 = vadd.f32 %v891_v34, %v636_v13 }
 0x2b6   : > { %v817_v37 = vadd.f32 %v816_v35, %v2485_v11  ;;  %v1960_v38 = vpop.f32.mrf.mxu1 }
 0x2b7   : > { %v903_v40 = vadd.f32 %v1960_v38, %v636_v13  ;;  %v818_v41 = vpop.f32.mrf.mxu0 }
 0x2b8   : > { %v1732_v43 = vpack.c.bf16 %v817_v37, %v813_v36  ;;  %v819_v46 = vadd.f32 %v818_v41, %v2487_v15  ;;  %v894_v47 = vpop.f32.mrf.mxu1 }
 0x2b9   : > { %v1782_v53 = vpack.c.bf16 %v903_v40, %v900_v39  ;;  %v895_v54 = vadd.f32 %v894_v47, %v636_v13  ;;  %v822_v56 = vpop.f32.mrf.mxu0  ;;  %v2076_v57 = vld [vmem:[#allocation2] sm:$0xff]  }
 0x2ba   : > { %1784 = vst [vmem:[#allocation2 + $0x8] sm:$0xff] %v1732_v43   ;;  %v1752_v59 = vpack.c.bf16 %v819_v46, %v815_v42  ;;  %1969 = vmatprep.mubr.bf16.mxu0 %v2076_v57  ;;  %v823_v60 = vadd.f32 %v822_v56, %v2485_v11  ;;  %v2079_v12 = vld [vmem:[#allocation4 + $0x8] sm:$0xff]  }
 0x2bb   : > { %1792 = vst [vmem:[#allocation4 + $0x18] sm:$0xff] %v1782_v53   ;;  %v1777_v49 = vpack.c.bf16 %v895_v54, %v892_v48  ;;  %v824_v50 = vpop.f32.mrf.mxu0  ;;  %v2084_v18 = vld [vmem:[#allocation3] sm:$0xff]  }
 0x2bc   : > { %1787 = vst [vmem:[#allocation3 + $0x8] sm:$0xff] %v1752_v59   ;;  %v825_v63 = vadd.f32 %v824_v50, %v2487_v15  ;;  %v2080_v14 = vld [vmem:[#allocation4] sm:$0xff]  }
 0x2bd   : > { %1791 = vst [vmem:[#allocation4 + $0x10] sm:$0xff] %v1777_v49   ;;  %v826_v51 = vpop.f32.mrf.mxu0 }
 0x2be   : > { %v827_v52 = vadd.f32 %v826_v51, %v2485_v11 }
 0x2bf   : > { %v828_v62 = vpop.f32.mrf.mxu0 }
 0x2c0   : > { %v1737_v1 = vpack.c.bf16 %v827_v52, %v823_v60  ;;  %v829_v2 = vadd.f32 %v828_v62, %v2487_v15 }
 0x2c1   : > { %v832_v3 = vpop.f32.mrf.mxu0 }
 0x2c2   : > { %1785 = vst [vmem:[#allocation2 + $0x10] sm:$0xff] %v1737_v1   ;;  %v1757_v55 = vpack.c.bf16 %v829_v2, %v825_v63  ;;  %v2077_v4 = vld [vmem:[#allocation4 + $0x18] sm:$0xff]   ;;  %v833_v61 = vadd.f32 %v832_v3, %v2485_v11 }
 0x2c3   : > { %v834_v58 = vpop.f32.mrf.mxu0  ;;  %1977 = vmatprep.subr.bf16.mxu1 %v2077_v4  ;;  %v2083_v17 = vld [vmem:[#allocation3 + $0x8] sm:$0xff]  }
 0x2c4   : > { %1788 = vst [vmem:[#allocation3 + $0x10] sm:$0xff] %v1757_v55   ;;  %v2078_v5 = vld [vmem:[#allocation4 + $0x10] sm:$0xff]   ;;  %1978 = vmatpush3.bf16.msra.mxu1 %v2077_v4  ;;  %v835_v8 = vadd.f32 %v834_v58, %v2487_v15 }
 0x2c5   : > { %v836_v6 = vpop.f32.mrf.mxu0  ;;  %1979 = vmatprep.subr.bf16.mxu1 %v2078_v5 }
 0x2c6   : > { %v837_v7 = vadd.f32 %v836_v6, %v2485_v11 }
 0x2c7   : > { %v838_v0 = vpop.f32.mrf.mxu0 }
 0x2c8   : > { %v1742_v9 = vpack.c.bf16 %v837_v7, %v833_v61  ;;  %v839_v10 = vadd.f32 %v838_v0, %v2487_v15  ;;  %1980 = vmatpush3.bf16.msra.mxu1 %v2078_v5  ;;  %v2085_v15 = vld [vmem:[#allocation2 + $0x8] sm:$0xff]  }
 0x2c9   : > { %1981 = vmatprep.subr.bf16.mxu1 %v2079_v12  ;;  %v2086_v19 = vld [vmem:[#allocation2 + $0x10] sm:$0xff]  }
 0x2ca   : > { %1786 = vst [vmem:[#allocation2 + $0x18] sm:$0xff] %v1742_v9   ;;  %v1762_v13 = vpack.c.bf16 %v839_v10, %v835_v8 }
 0x2cb   : > { %v2082_v11 = vld [vmem:[#allocation3 + $0x10] sm:$0xff]  }
 0x2cc   : > { %1789 = vst [vmem:[#allocation3 + $0x18] sm:$0xff] %v1762_v13   ;;  %1982 = vmatpush3.bf16.msra.mxu1 %v2079_v12 }
 0x2cd   : > { %1983 = vmatprep.subr.bf16.mxu1 %v2080_v14 }
 0x2d0   : > { %1984 = vmatpush3.bf16.msra.mxu1 %v2080_v14 }
 0x2d1   : > { %v2087_v20 = vld [vmem:[#allocation2 + $0x18] sm:$0xff]  }
 0x2d3   : > { %v2081_v16 = vld [vmem:[#allocation3 + $0x18] sm:$0xff]  }
 0x2d4   : > { %1961 = vmatprep.subr.bf16.mxu0 %v2081_v16 }
 0x2d5   : > { %1962 = vmatpush3.bf16.xpose.msra.mxu0 %v2081_v16 }
 0x2d6   : > { %1963 = vmatprep.subr.bf16.mxu0 %v2082_v11 }
 0x2dd   : > { %1964 = vmatpush3.bf16.xpose.msra.mxu0 %v2082_v11 }
 0x2de   : > { %1965 = vmatprep.subr.bf16.mxu0 %v2083_v17 }
 0x2e5   : > { %1966 = vmatpush3.bf16.xpose.msra.mxu0 %v2083_v17 }
 0x2e6   : > { %1967 = vmatprep.subr.bf16.mxu0 %v2084_v18 }
 0x2ed   : > { %1968 = vmatpush3.bf16.xpose.msra.mxu0 %v2084_v18  ;;  %v2088_v18 = vld [vmem:[%s2590_s6 + $0x38] sm:$0xff]  }
 0x2ee   : > { %1993 = vmatprep.subr.bf16.mxu1 %v2088_v18 }
 0x2f4   : > { %1970 = vmatmul.mubr.bf16.vlgmr.msra.gmra.mxu0 %v2085_v15  ;;  %v2089_v15 = vld [vmem:[%s2590_s6 + $0x30] sm:$0xff]  }
 0x2f5   : > { %1973 = vmatprep.mubr.bf16.mxu0 %v2086_v19  ;;  %v2090_v19 = vld [vmem:[%s2590_s6 + $0x28] sm:$0xff]  }
 0x2fc   : > { %1974 = vmatmul.mubr.bf16.gmra.mxu0 %v2087_v20  ;;  %v2091_v20 = vld [vmem:[%s2590_s6 + $0x20] sm:$0xff]  }
 0x3b4   : > { %v1971_v21 = vpop.f32.mrf.mxu0 }
 0x3b5   : > { %v1167_v22 = vsel %vm1160_vm1, %v1971_v21, -inf }
 0x3b6   : > { %1168 = vmax.xlane.f32.xlu1 %v1167_v22  ;;  %v1129_v23 = vpop.f32.mrf.mxu0  ;;  %v2093_v22 = vld [vmem:[%s2590_s6 + $0x10] sm:$0xff]  }
 0x3b7   : > { %v1161_v44 = vsel %vm1160_vm1, %v1129_v23, -inf }
 0x3b8   : > { %1162 = vmax.xlane.f32.xlu0 %v1161_v44  ;;  %v1972_v24 = vpop.f32.mrf.mxu0  ;;  %v2095_v44 = vld [vmem:[%s2590_s6] sm:$0xff]  }
 0x3b9   : > { %v1170_v45 = vsel %vm1160_vm1, %v1972_v24, -inf }
 0x3ba   : > { %1171 = vmax.xlane.f32.xlu1 %v1170_v45  ;;  %v1132_v25 = vpop.f32.mrf.mxu0 }
 0x3bb   : > { %v1164_v26 = vsel %vm1160_vm1, %v1132_v25, -inf }
 0x3bc   : > { %1165 = vmax.xlane.f32.xlu0 %v1164_v26  ;;  %v1975_v27 = vpop.f32.mrf.mxu0 }
 0x3bd   : > { %v1179_v32 = vsel %vm1160_vm1, %v1975_v27, -inf }
 0x3be   : > { %v1145_v28 = vpop.f32.mrf.mxu0 }
 0x3bf   : > { %v1173_v29 = vsel %vm1160_vm1, %v1145_v28, -inf }
 0x3c0   : > { %1174 = vmax.xlane.f32.xlu0 %v1173_v29  ;;  %v1976_v30 = vpop.f32.mrf.mxu0 }
 0x3c1   : > { %v1182_v34 = vsel %vm1160_vm1, %v1976_v30, -inf }
 0x3c2   : > { %v1148_v31 = vpop.f32.mrf.mxu0 }
 0x3c3   : > { %v1176_v33 = vsel %vm1160_vm1, %v1148_v31, -inf }
 0x3c4   : > { %1180 = vmax.xlane.f32.xlu0 %v1179_v32  ;;  %1177 = vmax.xlane.f32.xlu1 %v1176_v33 }
 0x3c8   : > { %1183 = vmax.xlane.f32.xlu1 %v1182_v34 }
 0x43f   : > { %v1169_v35 = vpop.xlane.xlu1 %1168 }
 0x440   : > { %v1187_v36 = vsub.f32 %v1971_v21, %v1169_v35  ;;  %v2092_v21 = vld [vmem:[%s2590_s6 + $0x18] sm:$0xff]  }
 0x441   : > { %v1163_v37 = vpop.xlane.xlu0 %1162 }
 0x442   : > { %v1185_v38 = vsub.f32 %v1129_v23, %v1163_v37  ;;  %v1197_v40 = vmul.f32 1.442695, %v1187_v36  ;;  %v2094_v23 = vld [vmem:[%s2590_s6 + $0x8] sm:$0xff]  }
 0x443   : > { %v1172_v39 = vpop.xlane.xlu1 %1171 }
 0x444   : > { %v1193_v41 = vmul.f32 1.442695, %v1185_v38  ;;  %v1188_v42 = vsub.f32 %v1972_v24, %v1172_v39 }
 0x445   : > { %v1166_v43 = vpop.xlane.xlu0 %1165 }
 0x446   : > { %2098 = vpow2.f32 %v1193_v41  ;;  %v1199_v46 = vmul.f32 1.442695, %v1188_v42  ;;  %v1186_v47 = vsub.f32 %v1132_v25, %v1166_v43 }
 0x447   : > { %2100 = vpow2.f32 %v1197_v40 }
 0x448   : > { %v1195_v48 = vmul.f32 1.442695, %v1186_v47  ;;  %2102 = vpow2.f32 %v1199_v46 }
 0x449   : > { %v1175_v53 = vpop.xlane.xlu0 %1174 }
 0x44a   : > { %2104 = vpow2.f32 %v1195_v48  ;;  %v1189_v54 = vsub.f32 %v1145_v28, %v1175_v53 }
 0x44c   : > { %v1201_v56 = vmul.f32 1.442695, %v1189_v54 }
 0x44d   : > { %v1181_v57 = vpop.xlane.xlu0 %1180  ;;  %v1178_v59 = vpop.xlane.xlu1 %1177 }
 0x44e   : > { %2106 = vpow2.f32 %v1201_v56  ;;  %v1191_v49 = vsub.f32 %v1975_v27, %v1181_v57  ;;  %v1190_v50 = vsub.f32 %v1148_v31, %v1178_v59 }
 0x450   : > { %v1205_v51 = vmul.f32 1.442695, %v1191_v49  ;;  %v1203_v60 = vmul.f32 1.442695, %v1190_v50 }
 0x451   : > { %v1184_v52 = vpop.xlane.xlu1 %1183 }
 0x452   : > { %2108 = vpow2.f32 %v1205_v51  ;;  %v1192_v62 = vsub.f32 %v1976_v30, %v1184_v52 }
 0x453   : > { %v2099_v63 = vpop.eup %2098  ;;  %2110 = vpow2.f32 %v1203_v60 }
 0x454   : > { %v1207_v1 = vmul.f32 1.442695, %v1192_v62  ;;  %v1209_v2 = vsel %vm1160_vm1, %v2099_v63, 0.0  ;;  %v2101_v3 = vpop.eup %2100 }
 0x455   : > { %1210 = vadd.xlane.f32.xlu0 %v1209_v2  ;;  %v2103_v55 = vpop.eup %2102  ;;  %v1215_v58 = vsel %vm1160_vm1, %v2101_v3, 0.0 }
 0x456   : > { %2112 = vpow2.f32 %v1207_v1  ;;  %v1234_v61 = vpack.c.bf16 %v2103_v55, %v2101_v3  ;;  %v1218_v8 = vsel %vm1160_vm1, %v2103_v55, 0.0  ;;  %v1687_v1 = vld [vmem:[%s2591_s7] ss:$0 sm:$0xff]  ;;  %v1505_v3 = vld [vmem:[%s2247_s20 + $0x10] sm:$0xff] }
 0x457   : > { %v2105_v4 = vpop.eup %2104  ;;  %v1503_v55 = vld [vmem:[%s2247_s20] sm:$0xff] }
 0x458   : > { %v1212_v5 = vsel %vm1160_vm1, %v2105_v4, 0.0  ;;  %v1233_v6 = vpack.c.bf16 %v2105_v4, %v2099_v63 }
 0x459   : > { %1216 = vadd.xlane.f32.xlu0 %v1215_v58  ;;  %1213 = vadd.xlane.f32.xlu1 %v1212_v5  ;;  %v1506_v58 = vld [vmem:[%s2247_s20 + $0x18] sm:$0xff]  ;;  %v1504_v5 = vld [vmem:[%s2247_s20 + $0x8] sm:$0xff] }
 0x45a   : > { %1985 = vmatprep.mubr.msk.bf16.mxu1 %vm1160_vm1, %v1233_v6  ;;  %v1509_v6 = vld [vmem:[%s2247_s20 + $0x30] sm:$0xff] }
 0x45b   : > { %v2107_v7 = vpop.eup %2106  ;;  %1986 = vmatmul.mubr.msk.bf16.vlgmr.msra.gmra.mxu1 %vm1160_vm1, %v1234_v61 }
 0x45c   : > { %v1221_v0 = vsel %vm1160_vm1, %v2107_v7, 0.0  ;;  %1994 = vmatpush3.bf16.msra.mxu1 %v2088_v18 }
 0x45d   : > { %1222 = vadd.xlane.f32.xlu0 %v1221_v0  ;;  %1219 = vadd.xlane.f32.xlu1 %v1218_v8  ;;  %v1510_v0 = vld [vmem:[%s2247_s20 + $0x38] sm:$0xff]  ;;  %v1508_v8 = vld [vmem:[%s2247_s20 + $0x28] sm:$0xff] }
 0x45e   : > { %1995 = vmatprep.subr.bf16.mxu1 %v2089_v15 }
 0x45f   : > { %v2109_v9 = vpop.eup %2108 }
 0x460   : > { %v2111_v10 = vpop.eup %2110  ;;  %v1227_v12 = vsel %vm1160_vm1, %v2109_v9, 0.0  ;;  %1996 = vmatpush3.bf16.msra.mxu1 %v2089_v15 }
 0x461   : > { %1228 = vadd.xlane.f32.xlu0 %v1227_v12  ;;  %v1224_v13 = vsel %vm1160_vm1, %v2111_v10, 0.0  ;;  %v1235_v14 = vpack.c.bf16 %v2111_v10, %v2107_v7  ;;  %1997 = vmatprep.subr.bf16.mxu1 %v2090_v19  ;;  %v1507_v7 = vld [vmem:[%s2247_s20 + $0x20] sm:$0xff] }
 0x462   : > { %1225 = vadd.xlane.f32.xlu1 %v1224_v13 }
 0x463   : > { %v2113_v16 = vpop.eup %2112  ;;  %1989 = vmatprep.mubr.msk.bf16.mxu1 %vm1160_vm1, %v1235_v14 }
 0x464   : > { %v1230_v11 = vsel %vm1160_vm1, %v2113_v16, 0.0  ;;  %v1236_v17 = vpack.c.bf16 %v2113_v16, %v2109_v9  ;;  %1998 = vmatpush3.bf16.msra.mxu1 %v2090_v19 }
 0x465   : > { %1999 = vmatprep.subr.bf16.mxu1 %v2091_v20 }
 0x466   : > { %1231 = vadd.xlane.f32.xlu1 %v1230_v11  ;;  %1990 = vmatmul.mubr.msk.bf16.gmra.mxu1 %vm1160_vm1, %v1236_v17 }
 0x468   : > { %2000 = vmatpush3.bf16.msra.mxu1 %v2091_v20 }
 0x469   : > { %2001 = vmatprep.subr.bf16.mxu1 %v2092_v21 }
 0x46c   : > { %2002 = vmatpush3.bf16.msra.mxu1 %v2092_v21 }
 0x46d   : > { %2003 = vmatprep.subr.bf16.mxu1 %v2093_v22 }
 0x470   : > { %2004 = vmatpush3.bf16.msra.mxu1 %v2093_v22 }
 0x471   : > { %2005 = vmatprep.subr.bf16.mxu1 %v2094_v23 }
 0x474   : > { %2006 = vmatpush3.bf16.msra.mxu1 %v2094_v23 }
 0x475   : > { %2007 = vmatprep.subr.bf16.mxu1 %v2095_v44 }
 0x478   : > { %2008 = vmatpush3.bf16.msra.mxu1 %v2095_v44 }
 0x4de   : > { %v1211_v45 = vpop.xlane.xlu0 %1210 }
 0x4df   : > { %2114 = vrcp.f32 %v1211_v45 }
 0x4e2   : > { %v1214_v24 = vpop.xlane.xlu1 %1213  ;;  %v1217_v26 = vpop.xlane.xlu0 %1216 }
 0x4e6   : > { %v1220_v25 = vpop.xlane.xlu1 %1219  ;;  %v1223_v28 = vpop.xlane.xlu0 %1222 }
 0x4e7   : > { %2116 = vrcp.f32 %v1220_v25 }
 0x4e8   : > { %2118 = vrcp.f32 %v1214_v24 }
 0x4e9   : > { %2120 = vrcp.f32 %v1217_v26 }
 0x4ea   : > { %2122 = vrcp.f32 %v1223_v28  ;;  %v1229_v31 = vpop.xlane.xlu0 %1228 }
 0x4eb   : > { %v1226_v27 = vpop.xlane.xlu1 %1225 }
 0x4ec   : > { %v2115_v33 = vpop.eup %2114 }
 0x4ef   : > { %v1232_v29 = vpop.xlane.xlu1 %1231 }
 0x4f0   : > { %2124 = vrcp.f32 %v1232_v29 }
 0x4f1   : > { %2126 = vrcp.f32 %v1226_v27 }
 0x4f2   : > { %2128 = vrcp.f32 %v1229_v31 }
 0x4f4   : > { %v2117_v35 = vpop.eup %2116 }
 0x4f5   : > { %v2119_v36 = vpop.eup %2118 }
 0x4f6   : > { %v2121_v39 = vpop.eup %2120 }
 0x4f7   : > { %v2123_v53 = vpop.eup %2122 }
 0x4fd   : > { %v2125_v56 = vpop.eup %2124 }
 0x4fe   : > { %v2127_v57 = vpop.eup %2126 }
 0x4ff   : > { %v2129_v50 = vpop.eup %2128 }
 0x51b   : > { %v1987_v30 = vpop.f32.mrf.mxu1 }
 0x51c   : > { %v1356_v42 = vmul.f32 %v2121_v39, %v1987_v30 }
 0x51d   : > { %v1315_v32 = vpop.f32.mrf.mxu1 }
 0x51e   : > { %v1354_v40 = vmul.f32 %v2115_v33, %v1315_v32 }
 0x51f   : > { %v1988_v34 = vpop.f32.mrf.mxu1 }
 0x520   : > { %v1357_v37 = vmul.f32 %v2117_v35, %v1988_v34 }
 0x521   : > { %v1318_v38 = vpop.f32.mrf.mxu1 }
 0x522   : > { %v1355_v41 = vmul.f32 %v2119_v36, %v1318_v38  ;;  %v1363_v46 = vpack.c.bf16 %v1357_v37, %v1356_v42 }
 0x524   : > { %v1362_v43 = vpack.c.bf16 %v1355_v41, %v1354_v40 }
 0x526   : > { %v1991_v47 = vpop.f32.mrf.mxu1  ;;  %2009 = vmatprep.mubr.bf16.mxu1 %v1362_v43 }
 0x527   : > { %2010 = vmatmul.mubr.bf16.vlgmr.msra.gmra.mxu1 %v1363_v46  ;;  %v1360_v52 = vmul.f32 %v2129_v50, %v1991_v47 }
 0x528   : > { %v1331_v48 = vpop.f32.mrf.mxu1 }
 0x529   : > { %v1358_v51 = vmul.f32 %v2123_v53, %v1331_v48 }
 0x52a   : > { %v1992_v54 = vpop.f32.mrf.mxu1 }
 0x52b   : > { %v1361_v59 = vmul.f32 %v2125_v56, %v1992_v54 }
 0x52c   : > { %v1334_v49 = vpop.f32.mrf.mxu1 }
 0x52d   : > { %v1359_v60 = vmul.f32 %v2127_v57, %v1334_v49  ;;  %v1365_v63 = vpack.c.bf16 %v1361_v59, %v1360_v52 }
 0x52f   : > { %v1364_v62 = vpack.c.bf16 %v1359_v60, %v1358_v51 }
 0x531   : > { %2013 = vmatprep.mubr.bf16.mxu1 %v1364_v62 }
 0x532   : > { %2014 = vmatmul.mubr.bf16.gmra.mxu1 %v1365_v63 }
 0x5e7   : > { %v2011_v2 = vpop.f32.mrf.mxu1 }
 0x5e8   : > { %v1480_v4 = vadd.f32 %v2011_v2, %v1687_v1 }
 0x5e9   : > { %v1471_v61 = vpop.f32.mrf.mxu1 }
 0x5ea   : > { %v1513_v9 = vadd.f32 %v1505_v3, %v1480_v4  ;;  %v1472_v10 = vadd.f32 %v1687_v1, %v1471_v61 }
 0x5eb   : > { %v2012_v12 = vpop.f32.mrf.mxu1 }
 0x5ec   : > { %v1511_v13 = vadd.f32 %v1503_v55, %v1472_v10  ;;  %v1483_v14 = vadd.f32 %v2012_v12, %v1687_v1  ;;  %1521 = vst [vmem:[%s2562_s23 + $0x10] sm:$0xff] %v1513_v9 }
 0x5ed   : > { %v1474_v16 = vpop.f32.mrf.mxu1 }
 0x5ee   : > { %v1514_v11 = vadd.f32 %v1506_v58, %v1483_v14  ;;  %v1475_v17 = vadd.f32 %v1687_v1, %v1474_v16  ;;  %1519 = vst [vmem:[%s2562_s23] sm:$0xff] %v1511_v13 }
 0x5f0   : > { %v1512_v18 = vadd.f32 %v1504_v5, %v1475_v17  ;;  %1522 = vst [vmem:[%s2562_s23 + $0x18] sm:$0xff] %v1514_v11 }
 0x5f2   : > { %v2015_v15 = vpop.f32.mrf.mxu1  ;;  %1520 = vst [vmem:[%s2562_s23 + $0x8] sm:$0xff] %v1512_v18 }
 0x5f3   : > { %v1496_v19 = vadd.f32 %v2015_v15, %v1687_v1 }
 0x5f4   : > { %v1487_v20 = vpop.f32.mrf.mxu1 }
 0x5f5   : > { %v1517_v21 = vadd.f32 %v1509_v6, %v1496_v19  ;;  %v1488_v22 = vadd.f32 %v1687_v1, %v1487_v20 }
 0x5f6   : > { %v2016_v23 = vpop.f32.mrf.mxu1 }
 0x5f7   : > { %v1515_v44 = vadd.f32 %v1507_v7, %v1488_v22  ;;  %v1499_v24 = vadd.f32 %v2016_v23, %v1687_v1  ;;  %1525 = vst [vmem:[%s2562_s23 + $0x30] sm:$0xff] %v1517_v21 }
 0x5f8   : > { %v1490_v45 = vpop.f32.mrf.mxu1 }
 0x5f9   : > { %v1518_v25 = vadd.f32 %v1510_v0, %v1499_v24  ;;  %v1491_v26 = vadd.f32 %v1687_v1, %v1490_v45  ;;  %1523 = vst [vmem:[%s2562_s23 + $0x20] sm:$0xff] %v1515_v44 }
 0x5fb   : > { %v1516_v27 = vadd.f32 %v1508_v8, %v1491_v26  ;;  %1526 = vst [vmem:[%s2562_s23 + $0x38] sm:$0xff] %v1518_v25 }
 0x5fd   : > { %1524 = vst [vmem:[%s2562_s23 + $0x28] sm:$0xff] %v1516_v27 }
 0x5fe PF: > { %s18_s29 = sadd.s32 1, %s2152_s29   ;;  %s2593_s27 = smov %s2148_s28 }
 0x5ff   : > { %p15_p5 = scmp.ge.s32.totalorder %s18_s29, 4   ;;  %s2594_s28 = smov %s2596_s30 }
 0x601   :  { %17 = sbr.rel (!%p15_p5) target bundleno = 2 (0x2), region = 88 }

</bundles_post_ra>
